<compile_context>
chip_gen: v7x
topology: tpu7x:2x2x1
jax: 0.10.0
libtpu: 0.0.40
codegen_flags: <defaults>
</compile_context>

<pallas_src>
import functools

import jax
import jax.numpy as jnp
from jax.experimental import pallas as pl
from jax.experimental.pallas import tpu as pltpu


def _ce_label_smooth_kernel(logits_ref, labels_ref, out_ref, *,
                            epsilon, num_classes, batch_size, block_rows):
    i = pl.program_id(0)

    # (TB, K) logits tile; reductions in f32 (in-kernel cast, free vs. the DMA).
    x = logits_ref[...].astype(jnp.float32)
    tb, k = x.shape
    labels = labels_ref[...]                                     # (TB, 1) int32

    # Row-wise logsumexp (numerically stable).
    m = jnp.max(x, axis=1, keepdims=True)                        # (TB, 1)
    sum_exp = jnp.sum(jnp.exp(x - m), axis=1, keepdims=True)     # (TB, 1)
    lse = m + jnp.log(sum_exp)                                   # (TB, 1)

    # Fused smoothed-weight reduction: w_k = eps/K + (1-eps)*[k==y];  sum_k w_k == 1
    #   => per-row loss = lse - sum_k w_k * x_k   (no one_hot / row_sum tensors).
    uni = epsilon / num_classes
    class_ids = jax.lax.broadcasted_iota(jnp.int32, (tb, k), 1)
    coef = jnp.where(class_ids == labels, 1.0 - epsilon + uni, uni)
    weighted = jnp.sum(coef * x, axis=1, keepdims=True)          # (TB, 1)
    per_row = lse - weighted

    # Mask rows past the true batch size (padded last tile reads garbage; the
    # where-select is NaN/Inf-safe for the not-taken branch).
    row_ids = i * block_rows + jax.lax.broadcasted_iota(jnp.int32, (tb, 1), 0)
    per_row = jnp.where(row_ids < batch_size, per_row, 0.0)

    partial = jnp.sum(per_row)
    # Lane-dense, unmasked store of this tile's partial sum.
    out_ref[...] = jnp.broadcast_to(partial, out_ref.shape)


def _round_up(x, m):
    return ((x + m - 1) // m) * m


def _pick_block_rows(B, K, itemsize):
    """Byte-budgeted batch tile + VMEM limit, derived per TPU generation."""
    try:
        vmem_cap = int(pltpu.get_tpu_info().vmem_capacity_bytes)
    except Exception:  # pragma: no cover - fall back to the smallest (v7x: 64 MiB)
        vmem_cap = 64 * 1024 * 1024

    # Working budget for our tiles + in-kernel intermediates; leave generous
    # headroom under physical VMEM (v7x: 28 MiB of 64; v5e/v6e: 60 MiB of 128).
    working_budget = max(16 * 1024 * 1024, vmem_cap // 2 - 4 * 1024 * 1024)
    vmem_limit = min(working_budget + 20 * 1024 * 1024,
                     vmem_cap - 16 * 1024 * 1024)

    # Live VMEM bytes per batch row:
    #   2x double-buffered logits row (input dtype)
    # + ~3 f32 (K,) intermediates (cast / exp / weighted) materialized in-kernel
    # + 2x double-buffered labels row, lane-padded (TB,1) -> (TB,128) in VMEM.
    bytes_per_row = 2 * K * itemsize + 3 * K * 4 + 2 * 128 * 4
    tb = working_budget // max(1, bytes_per_row)
    # Cap rows: keeps the lane-padded labels block small; the HBM roofline
    # already plateaus by ~1-4 MiB logits tiles.
    tb = max(8, min(4096, (tb // 8) * 8))

    if B > tb:
        return tb, vmem_limit

    # Whole batch fits one tile.  For large-enough B, still split so the v7x
    # megacore ('parallel' grid axis) gets >= 2 (>= 4) grid steps; the ~0.35us
    # per-step overhead is negligible at these sizes.
    if B >= 1024:
        min_tiles = 4
    elif B >= 128:
        min_tiles = 2
    else:
        return B, vmem_limit
    return min(tb, _round_up(-(-B // min_tiles), 8)), vmem_limit


def cross_entropy_label_smooth(logits, targets, *, epsilon=0.1, block_rows=None):
    """logits: (B, K) float (f32 or bf16); targets: (B,) int class indices.

    Returns the scalar f32 label-smoothed cross-entropy loss (mean over batch).
    """
    B, K = logits.shape
    labels2d = targets.reshape(B, 1).astype(jnp.int32)
    itemsize = jnp.dtype(logits.dtype).itemsize

    vmem_limit = 48 * 1024 * 1024
    if block_rows is None:
        block_rows, vmem_limit = _pick_block_rows(B, K, itemsize)
    TB = int(block_rows)
    num_tiles = -(-B // TB)

    kernel = functools.partial(
        _ce_label_smooth_kernel,
        epsilon=float(epsilon),
        num_classes=int(K),
        batch_size=int(B),
        block_rows=TB,
    )

    cost = pl.CostEstimate(
        flops=4 * B * K,
        transcendentals=B * K,
        bytes_accessed=B * K * itemsize + B * 4 + num_tiles * 8 * 128 * 4,
    )

    out = pl.pallas_call(
        kernel,
        out_shape=jax.ShapeDtypeStruct((num_tiles * 8, 128), jnp.float32),
        grid=(num_tiles,),
        in_specs=[
            pl.BlockSpec((TB, K), lambda i: (i, 0)),   # logits tile (input dtype)
            pl.BlockSpec((TB, 1), lambda i: (i, 0)),   # labels tile
        ],
        # One (8,128) output block per grid step -> no cross-step dependence,
        # so the batch axis can be "parallel" (megacore sharding on v7x).
        out_specs=pl.BlockSpec((8, 128), lambda i: (i, 0)),
        compiler_params=pltpu.CompilerParams(
            dimension_semantics=("parallel",),
            vmem_limit_bytes=int(vmem_limit),
        ),
        cost_estimate=cost,
    )(logits, labels2d)

    # One useful value per tile at row tile*8, lane 0; final reduce + mean-over-batch.
    return jnp.sum(out[::8, 0]) / jnp.float32(B)


if __name__ == "__main__":
    key = jax.random.PRNGKey(0)

    def ref_loss(logits, targets, eps):
        B, K = logits.shape
        log_probs = jax.nn.log_softmax(logits.astype(jnp.float32), axis=1)
        one_hot = jax.nn.one_hot(targets, K, dtype=jnp.float32)
        smoothed = (1.0 - eps) * one_hot + eps / K
        return jnp.sum(-smoothed * log_probs) / B

    k1, k2, k3, k4, k5, k6 = jax.random.split(key, 6)

    # Case 1: single-tile path (small batch / class count), auto tile sizing.
    B1, K1 = 8, 32
    logits1 = jax.random.normal(k1, (B1, K1), dtype=jnp.float32)
    targets1 = jax.random.randint(k2, (B1,), 0, K1, dtype=jnp.int32)
    loss1 = jax.block_until_ready(
        cross_entropy_label_smooth(logits1, targets1, epsilon=0.1))
    ref1 = ref_loss(logits1, targets1, 0.1)
    assert jnp.allclose(loss1, ref1, rtol=1e-5, atol=1e-4), (loss1, ref1)

    # Case 2: multi-tile grid with a padded (masked) last tile.
    B2, K2 = 20, 128
    logits2 = jax.random.normal(k3, (B2, K2), dtype=jnp.float32)
    targets2 = jax.random.randint(k4, (B2,), 0, K2, dtype=jnp.int32)
    loss2 = jax.block_until_ready(
        cross_entropy_label_smooth(logits2, targets2, epsilon=0.1, block_rows=8))
    ref2 = ref_loss(logits2, targets2, 0.1)
    assert jnp.allclose(loss2, ref2, rtol=1e-5, atol=1e-4), (loss2, ref2)

    # Case 3: bf16 logits passed through (no wrapper cast; f32 math in-kernel).
    B3, K3 = 16, 64
    logits3 = jax.random.normal(k5, (B3, K3), dtype=jnp.float32).astype(jnp.bfloat16)
    targets3 = jax.random.randint(k6, (B3,), 0, K3, dtype=jnp.int32)
    loss3 = jax.block_until_ready(
        cross_entropy_label_smooth(logits3, targets3, epsilon=0.1))
    ref3 = ref_loss(logits3, targets3, 0.1)
    assert jnp.allclose(loss3, ref3, rtol=1e-4, atol=1e-3), (loss3, ref3)

    print("KERNEL_OK")
</pallas_src>

<mosaic_0001>
module attributes {stable_mosaic.version = 11 : i64} {
  func.func @_ce_label_smooth_kernel(%arg0: i32, %arg1: memref<8x32xf32, #tpu.memory_space<vmem>>, %arg2: memref<8x1xi32, #tpu.memory_space<vmem>>, %arg3: memref<8x128xf32, #tpu.memory_space<vmem>>) attributes {dimension_semantics = [#tpu.dimension_semantics<parallel>], iteration_bounds = array<i64: 1>, scalar_prefetch = 0 : i64, scratch_operands = 0 : i64, tpu.core_type = #tpu.core_type<tc>, window_params = [{transform_indices = @transform_0, window_bounds = array<i64: 8, 32>}, {transform_indices = @transform_1, window_bounds = array<i64: 8, 1>}, {transform_indices = @transform_2, window_bounds = array<i64: 8, 128>}]} {
    %c0 = arith.constant 0 : index
    %c0_0 = arith.constant 0 : index
    %0 = vector.load %arg1[%c0, %c0_0] : memref<8x32xf32, #tpu.memory_space<vmem>>, vector<8x32xf32>
    %c0_1 = arith.constant 0 : index
    %c0_2 = arith.constant 0 : index
    %1 = vector.load %arg2[%c0_1, %c0_2] : memref<8x1xi32, #tpu.memory_space<vmem>>, vector<8x1xi32>
    %cst = arith.constant dense<0xFF800000> : vector<8xf32>
    %2 = vector.multi_reduction <maximumf>, %0, %cst [1] : vector<8x32xf32> to vector<8xf32>
    %3 = vector.shape_cast %2 : vector<8xf32> to vector<8x1xf32>
    %4 = vector.broadcast %3 : vector<8x1xf32> to vector<8x32xf32>
    %5 = arith.subf %0, %4 : vector<8x32xf32>
    %6 = math.exp %5 : vector<8x32xf32>
    %cst_3 = arith.constant dense<0.000000e+00> : vector<8xf32>
    %7 = vector.multi_reduction <add>, %6, %cst_3 [1] : vector<8x32xf32> to vector<8xf32>
    %8 = vector.shape_cast %7 : vector<8xf32> to vector<8x1xf32>
    %9 = math.log %8 : vector<8x1xf32>
    %10 = arith.addf %3, %9 : vector<8x1xf32>
    %11 = tpu.iota {dimensions = array<i32: 1>} : vector<8x32xi32>
    %12 = vector.broadcast %1 : vector<8x1xi32> to vector<8x32xi32>
    %13 = arith.cmpi eq, %11, %12 : vector<8x32xi32>
    %cst_4 = arith.constant 0.903124988 : f32
    %cst_5 = arith.constant 3.125000e-03 : f32
    %14 = vector.broadcast %cst_4 : f32 to vector<8x32xf32>
    %15 = vector.broadcast %cst_5 : f32 to vector<8x32xf32>
    %16 = arith.select %13, %14, %15 : vector<8x32xi1>, vector<8x32xf32>
    %17 = arith.mulf %16, %0 : vector<8x32xf32>
    %cst_6 = arith.constant dense<0.000000e+00> : vector<8xf32>
    %18 = vector.multi_reduction <add>, %17, %cst_6 [1] : vector<8x32xf32> to vector<8xf32>
    %19 = vector.shape_cast %18 : vector<8xf32> to vector<8x1xf32>
    %20 = arith.subf %10, %19 : vector<8x1xf32>
    %c8_i32 = arith.constant 8 : i32
    %21 = arith.muli %arg0, %c8_i32 : i32
    %22 = tpu.iota {dimensions = array<i32: 0>} : vector<8x1xi32>
    %23 = vector.broadcast %21 : i32 to vector<8x1xi32>
    %24 = arith.addi %23, %22 : vector<8x1xi32>
    %c8_i32_7 = arith.constant 8 : i32
    %25 = vector.broadcast %c8_i32_7 : i32 to vector<8x1xi32>
    %26 = arith.cmpi slt, %24, %25 : vector<8x1xi32>
    %cst_8 = arith.constant 0.000000e+00 : f32
    %27 = vector.broadcast %cst_8 : f32 to vector<8x1xf32>
    %28 = arith.select %26, %20, %27 : vector<8x1xi1>, vector<8x1xf32>
    %29 = vector.shape_cast %28 : vector<8x1xf32> to vector<1x8x1xf32>
    %cst_9 = arith.constant dense<0.000000e+00> : vector<1xf32>
    %30 = vector.multi_reduction <add>, %29, %cst_9 [1, 2] : vector<1x8x1xf32> to vector<1xf32>
    %31 = vector.shape_cast %30 : vector<1xf32> to vector<1x1x1xf32>
    %32 = vector.extract %31[0, 0, 0] : f32 from vector<1x1x1xf32>
    %33 = vector.broadcast %32 : f32 to vector<8x128xf32>
    %c0_10 = arith.constant 0 : index
    %c0_11 = arith.constant 0 : index
    %34 = vector.load %arg3[%c0_10, %c0_11] : memref<8x128xf32, #tpu.memory_space<vmem>>, vector<8x128xf32>
    tpu.vector_store %arg3[%c0_10, %c0_11], %33 {strides = array<i32>} : memref<8x128xf32, #tpu.memory_space<vmem>>, vector<8x128xf32>,
    return
  }
  func.func @transform_0(%arg0: i32) -> (i32, i32) {
    %c0_i32 = arith.constant 0 : i32
    %c0_i32_0 = arith.constant 0 : i32
    return %arg0, %c0_i32 : i32, i32
  }
  func.func @transform_1(%arg0: i32) -> (i32, i32) {
    %c0_i32 = arith.constant 0 : i32
    %c0_i32_0 = arith.constant 0 : i32
    return %arg0, %c0_i32 : i32, i32
  }
  func.func @transform_2(%arg0: i32) -> (i32, i32) {
    %c0_i32 = arith.constant 0 : i32
    %c0_i32_0 = arith.constant 0 : i32
    return %arg0, %c0_i32 : i32, i32
  }
}

</mosaic_0001>

<bundles_post_ra>
// kernel: tpu_custom_call.1
= control target key start
LH: loop header
LB: loop body
LE: loop exit
PB: predicated region body
PF: predicated region fallthrough
CT: control target
= control target key end

     0   :  { %vm14_vm0 = vcmask 261120   ;;  %s146_s0 = inlined_call_operand.vmem [shape: f32[8,32], index: 0, kind: input, shape index: {}]   ;;  %s147_s1 = inlined_call_operand.vmem [shape: s32[8,1], index: 1, kind: input, shape index: {}]   ;;  %s148_s2 = inlined_call_operand.hbm [shape: f32[8,128], index: 2, kind: output, shape index: {}]  }
   0x1   :  { %v12_v0 = vld [vmem:[%s146_s0] sm:$0xff] }
   0x2   :  { %7 = vsyncpa [#allocation3], 0  ;;  %v15_v1 = vsel %vm14_vm0, %v12_v0, -inf  ;;  %v107_v2 = vmov 0   ;;  %v13_v3 = vld [vmem:[%s147_s1] sm:$0xff]  ;;  %v27_v6 = vlaneseq  ;;  %vm46_vm2 = vcmask 7168  }
   0x3   :  { %78 = vset.pattern.permute.xlu0 %v107_v2  ;;  %v108_v10 = vmov 0.003125   ;;  %s109_s0 = smov [#allocation2]  }
   0x4   :  { %16 = vmax.xlane.f32.xlu0 %v15_v1  ;;  %v28_v8 = vand.u32 127, %v27_v6  ;;  %s65_s1 = sshll.u32 %s109_s0, 4  ;;  %s66_s1 = int_to_ptr.vmem [resolvable:$true] %s65_s1 }
   0x5   :  { %s83_s14 = scalar_lea.vmem %s66_s1, 128  ;;  %p88_p1 = scmp.lt.s32.totalorder %s66_s1, %s66_s1 }
   0x6   :  { %p84_p0 = scmp.ne.s32.totalorder %s66_s1, %s83_s14  ;;  %p89_p2 = scmp.lt.s32.totalorder %s83_s14, %s83_s14 }
   0x8   :  { %p90_p3 = por %p89_p2, %p88_p1 }
   0xa   :  { %p91_p4 = pnand %p90_p3, %p84_p0 }
  0x1a   :  { %30 = vperm.xlu0 %78, %v13_v3  }
  0x91   :  { %v17_v4 = vpop.xlane.xlu0 %16 }
  0x92   :  { %v18_v5 = vsub.f32 %v12_v0, %v17_v4 }
  0x94   :  { %v19_v7 = vmul.f32 1.442695, %v18_v5 }
  0x96   :  { %79 = vpow2.f32 %v19_v7 }
  0x99   :  { %v31_v9 = vpop.permute.xlu0 %30 }
  0x9a   :  { %vm32_vm1 = vcmp.eq.s32.totalorder %v28_v8, %v31_v9 }
  0x9b   :  { %v33_v11 = vsel %vm32_vm1, 0.903125, %v108_v10 }
  0x9c   :  { %v34_v12 = vmul.f32 %v33_v11, %v12_v0 }
  0x9e   :  { %v35_v15 = vsel %vm14_vm0, %v34_v12, 0.0 }
  0xa0   :  { %v80_v13 = vpop.eup %79 }
  0xa1   :  { %v21_v14 = vsel %vm14_vm0, %v80_v13, 0.0 }
  0xa2   :  { %22 = vadd.xlane.f32.xlu1 %v21_v14 }
  0xa6   :  { %36 = vadd.xlane.f32.xlu1 %v35_v15 }
 0x12f   :  { %v23_v16 = vpop.xlane.xlu1 %22 }
 0x130   :  { %81 = vlog2.f32 %v23_v16 }
 0x133   :  { %v37_v19 = vpop.xlane.xlu1 %36 }
 0x13a   :  { %v82_v17 = vpop.eup %81 }
 0x13b   :  { %v25_v18 = vmul.f32 0.6931472, %v82_v17 }
 0x13d   :  { %v26_v20 = vadd.f32 %v25_v18, %v17_v4 }
 0x13f   :  { %v38_v21 = vsub.f32 %v26_v20, %v37_v19 }
 0x141   :  { %v47_v22 = vsel %vm46_vm2, %v38_v21, 0.0 }
 0x142   :  { %48 = vadd.xlane.f32.xlu1 %v47_v22 }
 0x1cf   :  { %v49_v23 = vpop.xlane.xlu1 %48 }
 0x1d0   :  { %v50_v24 = vrot.slane %v49_v23, 4 }
 0x1d2   :  { %v51_v25 = vadd.f32 %v50_v24, %v49_v23 }
 0x1d4   :  { %v52_v26 = vrot.slane %v51_v25, 2 }
 0x1d6   :  { %v53_v27 = vadd.f32 %v52_v26, %v51_v25 }
 0x1d8   :  { %v54_v28 = vrot.slane %v53_v27, 1 }
 0x1da   :  { %v55_v29 = vadd.f32 %v54_v28, %v53_v27 }
 0x1dc   :  { %73 = vpush %v55_v29 }
 0x20d   :  { %s74_s13 = spop %73 }
 0x20e   :  { %v57_v30 = vstv %s74_s13 }
 0x20f   :  { %58 = vst [vmem:[#allocation2] sm:$0xff] %v57_v30 }
 0x210   :  { %94 = shalt.err (!%p91_p4)
}
 0x211   :  { %s95_s17 = scalar_lea.hbm %s148_s2, 128 }
 0x212   :  { %p96_p5 = scmp.ne.s32.totalorder %s148_s2, %s95_s17  ;;  %p99_p6 = scmp.lt.u32.totalorder %s95_s17, %s148_s2 }
 0x214   :  { %p101_p7 = pnand %p99_p6, %p96_p5 }
 0x216   :  { %104 = shalt.err (!%p101_p7)
}
 0x217   :  { %68 = dma.vmem_to_hbm [thread:$0]  %s66_s1, 128, %s148_s2, [#allocation3]  }
 0x218   :  { %105 = dma.done.wait [#allocation3], 128  }
 0x219   :  { %106 = vsyncadd [#allocation3], 4294967168 }
 0x21a   :  { %72 = vsyncpa [#allocation3], 1 }

</bundles_post_ra>
